<compile_context>
chip_gen: v7x
topology: tpu7x:2x2x1
jax: 0.10.0
libtpu: 0.0.40
codegen_flags: <defaults>
</compile_context>

<pallas_src>
import functools

import jax
import jax.numpy as jnp
from jax.experimental import pallas as pl
from jax.experimental.pallas import tpu as pltpu

EPS = 1e-5
LANE = 128
SUBLANE = 8


def _round_up(n, m):
    return ((n + m - 1) // m) * m


def _make_kernel(num_hidden, n_valid, n_padded):
    """Fused MLP+BN kernel for a fixed (static) number of hidden layers."""
    inv_n = 1.0 / float(n_valid)
    need_mask = n_padded != n_valid  # static

    def kernel(x_ref, *refs):
        # refs = [W0, b0, g0, beta0, ..., W_{n-1}, b, g, beta, Wout, bout, out_ref]
        out_ref = refs[-1]
        p = refs[:-1]

        if need_mask:
            # zero-out padded batch rows in the BN reductions only
            row = jax.lax.broadcasted_iota(jnp.int32, (n_padded, 1), 0)
            row_mask = (row < n_valid).astype(jnp.float32)

        h = x_ref[...]  # f32 (n_padded, ip)
        idx = 0
        for _ in range(num_hidden):
            w = p[idx][...]           # bf16 (in_p, dp)
            b = p[idx + 1][...]       # f32  (1, dp)
            gamma = p[idx + 2][...]   # f32  (1, dp)
            beta = p[idx + 3][...]    # f32  (1, dp)
            idx += 4

            # Linear: bf16 MXU matmul with f32 accumulation, then bias + ReLU (VPU)
            h = jnp.dot(h.astype(jnp.bfloat16), w,
                        preferred_element_type=jnp.float32) + b
            h = jnp.maximum(h, 0.0)

            # BatchNorm1d (training batch stats), fused:
            #   one pass for sum & sumsq, then a single per-element mul+add.
            hm = h * row_mask if need_mask else h
            s1 = jnp.sum(hm, axis=0, keepdims=True)
            s2 = jnp.sum(hm * h, axis=0, keepdims=True)       # = sum(mask * h^2)
            mean = s1 * inv_n
            var = jnp.maximum(s2 * inv_n - mean * mean, 0.0)  # biased variance
            scale = gamma * jax.lax.rsqrt(var + EPS)          # EUP rsqrt
            shift = beta - mean * scale
            h = h * scale + shift

        # trailing ReLU appended after the hidden stack
        h = jnp.maximum(h, 0.0)

        w_out = p[idx][...]      # bf16 (dp, op)
        b_out = p[idx + 1][...]  # f32  (1, op)
        y = jnp.dot(h.astype(jnp.bfloat16), w_out,
                    preferred_element_type=jnp.float32) + b_out
        out_ref[...] = jnp.maximum(y, 0.0)  # F.relu on the output

    return kernel


@functools.partial(jax.jit, static_argnames=("num_hidden",))
def hlnet_batchnorm_forward(x, params, num_hidden):
    """params: flat tuple (W0,b0,g0,beta0, ..., W_{n-1},b,g,beta, Wout,bout) in f32."""
    batch, input_dim = x.shape
    inter_dim = params[0].shape[1]
    out_dim = params[-1].shape[-1]

    # lane-dense padded sizes
    bp = _round_up(batch, SUBLANE)
    ip = _round_up(input_dim, LANE)
    dp = _round_up(inter_dim, LANE)
    op = _round_up(out_dim, LANE)

    # --- pad everything in the wrapper (zeros are neutral end-to-end) ---
    xp = jnp.pad(x.astype(jnp.float32), ((0, bp - batch), (0, ip - input_dim)))

    padded = []
    idx = 0
    in_d, in_p = input_dim, ip
    for _ in range(num_hidden):
        w, b, g, be = params[idx], params[idx + 1], params[idx + 2], params[idx + 3]
        idx += 4
        padded.append(jnp.pad(w.astype(jnp.bfloat16),
                              ((0, in_p - in_d), (0, dp - inter_dim))))
        padded.append(jnp.pad(b.astype(jnp.float32).reshape(1, -1),
                              ((0, 0), (0, dp - inter_dim))))
        padded.append(jnp.pad(g.astype(jnp.float32).reshape(1, -1),
                              ((0, 0), (0, dp - inter_dim))))   # gamma pads with 0
        padded.append(jnp.pad(be.astype(jnp.float32).reshape(1, -1),
                              ((0, 0), (0, dp - inter_dim))))   # beta pads with 0
        in_d, in_p = inter_dim, dp
    w_out, b_out = params[idx], params[idx + 1]
    padded.append(jnp.pad(w_out.astype(jnp.bfloat16),
                          ((0, dp - inter_dim), (0, op - out_dim))))
    padded.append(jnp.pad(b_out.astype(jnp.float32).reshape(1, -1),
                          ((0, 0), (0, op - out_dim))))

    n_in = 1 + len(padded)

    # --- cost estimate + VMEM sizing from the actual (padded) footprint ---
    flops = 0
    d_prev = ip
    for _ in range(num_hidden):
        flops += 2 * bp * d_prev * dp + 12 * bp * dp  # matmul + bias/relu/BN elementwise
        d_prev = dp
    flops += 2 * bp * dp * op + 2 * bp * op
    transcendentals = num_hidden * dp  # one rsqrt per feature per hidden layer
    param_bytes = sum(int(p.size) * p.dtype.itemsize for p in padded)
    io_bytes = bp * ip * 4 + bp * op * 4 + param_bytes
    act_bytes = 4 * bp * max(ip, dp, op) * 4  # a few live f32 activation slabs
    vmem_limit = int(min(64 << 20, max(16 << 20, 2 * (io_bytes + act_bytes))))

    kernel = _make_kernel(num_hidden, batch, bp)
    out_padded = pl.pallas_call(
        kernel,
        out_shape=jax.ShapeDtypeStruct((bp, op), jnp.float32),
        in_specs=[pl.BlockSpec(memory_space=pltpu.MemorySpace.VMEM)] * n_in,
        out_specs=pl.BlockSpec(memory_space=pltpu.MemorySpace.VMEM),
        compiler_params=pltpu.CompilerParams(vmem_limit_bytes=vmem_limit),
        cost_estimate=pl.CostEstimate(flops=flops,
                                      transcendentals=transcendentals,
                                      bytes_accessed=io_bytes),
    )(xp, *padded)

    return out_padded[:batch, :out_dim]


def init_params(key, input_dim, inter_dim, num_hidden, out_dim):
    """Deterministic synthetic init mimicking nn.Linear fan-in uniform + BN affine."""
    params = []
    in_dim = input_dim
    for _ in range(num_hidden):
        key, kw, kb = jax.random.split(key, 3)
        bound = 1.0 / jnp.sqrt(jnp.float32(in_dim))
        w = jax.random.uniform(kw, (in_dim, inter_dim), jnp.float32, -bound, bound)
        b = jax.random.uniform(kb, (1, inter_dim), jnp.float32, -bound, bound)
        gamma = jnp.ones((1, inter_dim), jnp.float32)   # BatchNorm1d weight init
        beta = jnp.zeros((1, inter_dim), jnp.float32)   # BatchNorm1d bias init
        params += [w, b, gamma, beta]
        in_dim = inter_dim
    key, kw, kb = jax.random.split(key, 3)
    bound = 1.0 / jnp.sqrt(jnp.float32(inter_dim))
    w_out = jax.random.uniform(kw, (inter_dim, out_dim), jnp.float32, -bound, bound)
    b_out = jax.random.uniform(kb, (1, out_dim), jnp.float32, -bound, bound)
    params += [w_out, b_out]
    return tuple(params)


def reference_forward(x, params, num_hidden, matmul_dtype=jnp.float32):
    """Pure-JAX reference of the same forward pass (for correctness check)."""
    h = x.astype(jnp.float32)
    idx = 0
    for _ in range(num_hidden):
        w, b, gamma, beta = params[idx], params[idx + 1], params[idx + 2], params[idx + 3]
        idx += 4
        h = jnp.dot(h.astype(matmul_dtype), w.astype(matmul_dtype),
                    preferred_element_type=jnp.float32) + b
        h = jnp.maximum(h, 0.0)
        mean = jnp.mean(h, axis=0, keepdims=True)
        var = jnp.mean((h - mean) ** 2, axis=0, keepdims=True)
        h = (h - mean) * jax.lax.rsqrt(var + EPS) * gamma + beta
    h = jnp.maximum(h, 0.0)
    y = jnp.dot(h.astype(matmul_dtype), params[idx].astype(matmul_dtype),
                preferred_element_type=jnp.float32) + params[idx + 1]
    return jnp.maximum(y, 0.0)


if __name__ == "__main__":
    # Small shapes implied by the module: (batch, input_dim) MLP input.
    # Batch is deliberately not a multiple of 8 and features not multiples of 128,
    # so the padding + masked-BN-statistics paths are exercised.
    batch, input_dim, inter_dim, num_hidden, out_dim = 13, 32, 32, 3, 8

    key = jax.random.PRNGKey(0)
    key, kx = jax.random.split(key)
    x = jax.random.normal(kx, (batch, input_dim), jnp.float32)
    params = init_params(key, input_dim, inter_dim, num_hidden, out_dim)

    out = hlnet_batchnorm_forward(x, params, num_hidden)
    out = jax.block_until_ready(out)
    assert out.shape == (batch, out_dim)

    # Tight check vs a reference using the same bf16-matmul / f32-accumulate arithmetic,
    # loose sanity check vs the pure-f32 reference (bf16 matmul precision).
    ref_bf16 = reference_forward(x, params, num_hidden, matmul_dtype=jnp.bfloat16)
    ref_f32 = reference_forward(x, params, num_hidden, matmul_dtype=jnp.float32)
    assert jnp.allclose(out, ref_bf16, atol=3e-2, rtol=3e-2), "mismatch vs bf16-matmul reference"
    assert jnp.allclose(out, ref_f32, atol=1.5e-1, rtol=1.5e-1), "mismatch vs f32 reference"

    print("KERNEL_OK")
</pallas_src>

<mosaic_0001>
module attributes {stable_mosaic.version = 11 : i64} {
  func.func @kernel(%arg0: memref<16x128xf32, #tpu.memory_space<vmem>>, %arg1: memref<128x128xbf16, #tpu.memory_space<vmem>>, %arg2: memref<1x128xf32, #tpu.memory_space<vmem>>, %arg3: memref<1x128xf32, #tpu.memory_space<vmem>>, %arg4: memref<1x128xf32, #tpu.memory_space<vmem>>, %arg5: memref<128x128xbf16, #tpu.memory_space<vmem>>, %arg6: memref<1x128xf32, #tpu.memory_space<vmem>>, %arg7: memref<1x128xf32, #tpu.memory_space<vmem>>, %arg8: memref<1x128xf32, #tpu.memory_space<vmem>>, %arg9: memref<128x128xbf16, #tpu.memory_space<vmem>>, %arg10: memref<1x128xf32, #tpu.memory_space<vmem>>, %arg11: memref<1x128xf32, #tpu.memory_space<vmem>>, %arg12: memref<1x128xf32, #tpu.memory_space<vmem>>, %arg13: memref<128x128xbf16, #tpu.memory_space<vmem>>, %arg14: memref<1x128xf32, #tpu.memory_space<vmem>>, %arg15: memref<16x128xf32, #tpu.memory_space<vmem>>) attributes {dimension_semantics = [], scalar_prefetch = 0 : i64, scratch_operands = 0 : i64, tpu.core_type = #tpu.core_type<tc>} {
    %0 = tpu.iota {dimensions = array<i32: 0>} : vector<16x1xi32>
    %c13_i32 = arith.constant 13 : i32
    %1 = vector.broadcast %c13_i32 : i32 to vector<16x1xi32>
    %2 = arith.cmpi slt, %0, %1 : vector<16x1xi32>
    %3 = arith.extui %2 : vector<16x1xi1> to vector<16x1xi32>
    %4 = arith.sitofp %3 : vector<16x1xi32> to vector<16x1xf32>
    %c0 = arith.constant 0 : index
    %c0_0 = arith.constant 0 : index
    %5 = vector.load %arg0[%c0, %c0_0] : memref<16x128xf32, #tpu.memory_space<vmem>>, vector<16x128xf32>
    %c0_1 = arith.constant 0 : index
    %c0_2 = arith.constant 0 : index
    %6 = vector.load %arg1[%c0_1, %c0_2] : memref<128x128xbf16, #tpu.memory_space<vmem>>, vector<128x128xbf16>
    %c0_3 = arith.constant 0 : index
    %c0_4 = arith.constant 0 : index
    %7 = vector.load %arg2[%c0_3, %c0_4] : memref<1x128xf32, #tpu.memory_space<vmem>>, vector<1x128xf32>
    %c0_5 = arith.constant 0 : index
    %c0_6 = arith.constant 0 : index
    %8 = vector.load %arg3[%c0_5, %c0_6] : memref<1x128xf32, #tpu.memory_space<vmem>>, vector<1x128xf32>
    %c0_7 = arith.constant 0 : index
    %c0_8 = arith.constant 0 : index
    %9 = vector.load %arg4[%c0_7, %c0_8] : memref<1x128xf32, #tpu.memory_space<vmem>>, vector<1x128xf32>
    %10 = arith.truncf %5 : vector<16x128xf32> to vector<16x128xbf16>
    %cst = arith.constant dense<0.000000e+00> : vector<16x128xf32>
    %11 = tpu.matmul %10, %6, %cst {dimension_numbers = #tpu.dot_dimension_numbers<[1], [0], [0], [1], [0, 0, 1, 1], [], []>} : vector<16x128xbf16>, vector<128x128xbf16>, vector<16x128xf32> -> vector<16x128xf32>
    %12 = vector.broadcast %7 : vector<1x128xf32> to vector<16x128xf32>
    %13 = arith.addf %11, %12 : vector<16x128xf32>
    %cst_9 = arith.constant 0.000000e+00 : f32
    %14 = vector.broadcast %cst_9 : f32 to vector<16x128xf32>
    %15 = arith.maximumf %13, %14 : vector<16x128xf32>
    %16 = vector.broadcast %4 : vector<16x1xf32> to vector<16x128xf32>
    %17 = arith.mulf %15, %16 : vector<16x128xf32>
    %cst_10 = arith.constant dense<0.000000e+00> : vector<128xf32>
    %18 = vector.multi_reduction <add>, %17, %cst_10 [0] : vector<16x128xf32> to vector<128xf32>
    %19 = vector.shape_cast %18 : vector<128xf32> to vector<1x128xf32>
    %20 = arith.mulf %17, %15 : vector<16x128xf32>
    %cst_11 = arith.constant dense<0.000000e+00> : vector<128xf32>
    %21 = vector.multi_reduction <add>, %20, %cst_11 [0] : vector<16x128xf32> to vector<128xf32>
    %22 = vector.shape_cast %21 : vector<128xf32> to vector<1x128xf32>
    %cst_12 = arith.constant 0.0769230798 : f32
    %23 = vector.broadcast %cst_12 : f32 to vector<1x128xf32>
    %24 = arith.mulf %19, %23 : vector<1x128xf32>
    %cst_13 = arith.constant 0.0769230798 : f32
    %25 = vector.broadcast %cst_13 : f32 to vector<1x128xf32>
    %26 = arith.mulf %22, %25 : vector<1x128xf32>
    %27 = arith.mulf %24, %24 : vector<1x128xf32>
    %28 = arith.subf %26, %27 : vector<1x128xf32>
    %cst_14 = arith.constant 0.000000e+00 : f32
    %29 = vector.broadcast %cst_14 : f32 to vector<1x128xf32>
    %30 = arith.maximumf %28, %29 : vector<1x128xf32>
    %cst_15 = arith.constant 9.99999974E-6 : f32
    %31 = vector.broadcast %cst_15 : f32 to vector<1x128xf32>
    %32 = arith.addf %30, %31 : vector<1x128xf32>
    %33 = math.rsqrt %32 : vector<1x128xf32>
    %34 = arith.mulf %8, %33 : vector<1x128xf32>
    %35 = arith.mulf %24, %34 : vector<1x128xf32>
    %36 = arith.subf %9, %35 : vector<1x128xf32>
    %37 = vector.broadcast %34 : vector<1x128xf32> to vector<16x128xf32>
    %38 = arith.mulf %15, %37 : vector<16x128xf32>
    %39 = vector.broadcast %36 : vector<1x128xf32> to vector<16x128xf32>
    %40 = arith.addf %38, %39 : vector<16x128xf32>
    %c0_16 = arith.constant 0 : index
    %c0_17 = arith.constant 0 : index
    %41 = vector.load %arg5[%c0_16, %c0_17] : memref<128x128xbf16, #tpu.memory_space<vmem>>, vector<128x128xbf16>
    %c0_18 = arith.constant 0 : index
    %c0_19 = arith.constant 0 : index
    %42 = vector.load %arg6[%c0_18, %c0_19] : memref<1x128xf32, #tpu.memory_space<vmem>>, vector<1x128xf32>
    %c0_20 = arith.constant 0 : index
    %c0_21 = arith.constant 0 : index
    %43 = vector.load %arg7[%c0_20, %c0_21] : memref<1x128xf32, #tpu.memory_space<vmem>>, vector<1x128xf32>
    %c0_22 = arith.constant 0 : index
    %c0_23 = arith.constant 0 : index
    %44 = vector.load %arg8[%c0_22, %c0_23] : memref<1x128xf32, #tpu.memory_space<vmem>>, vector<1x128xf32>
    %45 = arith.truncf %40 : vector<16x128xf32> to vector<16x128xbf16>
    %cst_24 = arith.constant dense<0.000000e+00> : vector<16x128xf32>
    %46 = tpu.matmul %45, %41, %cst_24 {dimension_numbers = #tpu.dot_dimension_numbers<[1], [0], [0], [1], [0, 0, 1, 1], [], []>} : vector<16x128xbf16>, vector<128x128xbf16>, vector<16x128xf32> -> vector<16x128xf32>
    %47 = vector.broadcast %42 : vector<1x128xf32> to vector<16x128xf32>
    %48 = arith.addf %46, %47 : vector<16x128xf32>
    %cst_25 = arith.constant 0.000000e+00 : f32
    %49 = vector.broadcast %cst_25 : f32 to vector<16x128xf32>
    %50 = arith.maximumf %48, %49 : vector<16x128xf32>
    %51 = vector.broadcast %4 : vector<16x1xf32> to vector<16x128xf32>
    %52 = arith.mulf %50, %51 : vector<16x128xf32>
    %cst_26 = arith.constant dense<0.000000e+00> : vector<128xf32>
    %53 = vector.multi_reduction <add>, %52, %cst_26 [0] : vector<16x128xf32> to vector<128xf32>
    %54 = vector.shape_cast %53 : vector<128xf32> to vector<1x128xf32>
    %55 = arith.mulf %52, %50 : vector<16x128xf32>
    %cst_27 = arith.constant dense<0.000000e+00> : vector<128xf32>
    %56 = vector.multi_reduction <add>, %55, %cst_27 [0] : vector<16x128xf32> to vector<128xf32>
    %57 = vector.shape_cast %56 : vector<128xf32> to vector<1x128xf32>
    %cst_28 = arith.constant 0.0769230798 : f32
    %58 = vector.broadcast %cst_28 : f32 to vector<1x128xf32>
    %59 = arith.mulf %54, %58 : vector<1x128xf32>
    %cst_29 = arith.constant 0.0769230798 : f32
    %60 = vector.broadcast %cst_29 : f32 to vector<1x128xf32>
    %61 = arith.mulf %57, %60 : vector<1x128xf32>
    %62 = arith.mulf %59, %59 : vector<1x128xf32>
    %63 = arith.subf %61, %62 : vector<1x128xf32>
    %cst_30 = arith.constant 0.000000e+00 : f32
    %64 = vector.broadcast %cst_30 : f32 to vector<1x128xf32>
    %65 = arith.maximumf %63, %64 : vector<1x128xf32>
    %cst_31 = arith.constant 9.99999974E-6 : f32
    %66 = vector.broadcast %cst_31 : f32 to vector<1x128xf32>
    %67 = arith.addf %65, %66 : vector<1x128xf32>
    %68 = math.rsqrt %67 : vector<1x128xf32>
    %69 = arith.mulf %43, %68 : vector<1x128xf32>
    %70 = arith.mulf %59, %69 : vector<1x128xf32>
    %71 = arith.subf %44, %70 : vector<1x128xf32>
    %72 = vector.broadcast %69 : vector<1x128xf32> to vector<16x128xf32>
    %73 = arith.mulf %50, %72 : vector<16x128xf32>
    %74 = vector.broadcast %71 : vector<1x128xf32> to vector<16x128xf32>
    %75 = arith.addf %73, %74 : vector<16x128xf32>
    %c0_32 = arith.constant 0 : index
    %c0_33 = arith.constant 0 : index
    %76 = vector.load %arg9[%c0_32, %c0_33] : memref<128x128xbf16, #tpu.memory_space<vmem>>, vector<128x128xbf16>
    %c0_34 = arith.constant 0 : index
    %c0_35 = arith.constant 0 : index
    %77 = vector.load %arg10[%c0_34, %c0_35] : memref<1x128xf32, #tpu.memory_space<vmem>>, vector<1x128xf32>
    %c0_36 = arith.constant 0 : index
    %c0_37 = arith.constant 0 : index
    %78 = vector.load %arg11[%c0_36, %c0_37] : memref<1x128xf32, #tpu.memory_space<vmem>>, vector<1x128xf32>
    %c0_38 = arith.constant 0 : index
    %c0_39 = arith.constant 0 : index
    %79 = vector.load %arg12[%c0_38, %c0_39] : memref<1x128xf32, #tpu.memory_space<vmem>>, vector<1x128xf32>
    %80 = arith.truncf %75 : vector<16x128xf32> to vector<16x128xbf16>
    %cst_40 = arith.constant dense<0.000000e+00> : vector<16x128xf32>
    %81 = tpu.matmul %80, %76, %cst_40 {dimension_numbers = #tpu.dot_dimension_numbers<[1], [0], [0], [1], [0, 0, 1, 1], [], []>} : vector<16x128xbf16>, vector<128x128xbf16>, vector<16x128xf32> -> vector<16x128xf32>
    %82 = vector.broadcast %77 : vector<1x128xf32> to vector<16x128xf32>
    %83 = arith.addf %81, %82 : vector<16x128xf32>
    %cst_41 = arith.constant 0.000000e+00 : f32
    %84 = vector.broadcast %cst_41 : f32 to vector<16x128xf32>
    %85 = arith.maximumf %83, %84 : vector<16x128xf32>
    %86 = vector.broadcast %4 : vector<16x1xf32> to vector<16x128xf32>
    %87 = arith.mulf %85, %86 : vector<16x128xf32>
    %cst_42 = arith.constant dense<0.000000e+00> : vector<128xf32>
    %88 = vector.multi_reduction <add>, %87, %cst_42 [0] : vector<16x128xf32> to vector<128xf32>
    %89 = vector.shape_cast %88 : vector<128xf32> to vector<1x128xf32>
    %90 = arith.mulf %87, %85 : vector<16x128xf32>
    %cst_43 = arith.constant dense<0.000000e+00> : vector<128xf32>
    %91 = vector.multi_reduction <add>, %90, %cst_43 [0] : vector<16x128xf32> to vector<128xf32>
    %92 = vector.shape_cast %91 : vector<128xf32> to vector<1x128xf32>
    %cst_44 = arith.constant 0.0769230798 : f32
    %93 = vector.broadcast %cst_44 : f32 to vector<1x128xf32>
    %94 = arith.mulf %89, %93 : vector<1x128xf32>
    %cst_45 = arith.constant 0.0769230798 : f32
    %95 = vector.broadcast %cst_45 : f32 to vector<1x128xf32>
    %96 = arith.mulf %92, %95 : vector<1x128xf32>
    %97 = arith.mulf %94, %94 : vector<1x128xf32>
    %98 = arith.subf %96, %97 : vector<1x128xf32>
    %cst_46 = arith.constant 0.000000e+00 : f32
    %99 = vector.broadcast %cst_46 : f32 to vector<1x128xf32>
    %100 = arith.maximumf %98, %99 : vector<1x128xf32>
    %cst_47 = arith.constant 9.99999974E-6 : f32
    %101 = vector.broadcast %cst_47 : f32 to vector<1x128xf32>
    %102 = arith.addf %100, %101 : vector<1x128xf32>
    %103 = math.rsqrt %102 : vector<1x128xf32>
    %104 = arith.mulf %78, %103 : vector<1x128xf32>
    %105 = arith.mulf %94, %104 : vector<1x128xf32>
    %106 = arith.subf %79, %105 : vector<1x128xf32>
    %107 = vector.broadcast %104 : vector<1x128xf32> to vector<16x128xf32>
    %108 = arith.mulf %85, %107 : vector<16x128xf32>
    %109 = vector.broadcast %106 : vector<1x128xf32> to vector<16x128xf32>
    %110 = arith.addf %108, %109 : vector<16x128xf32>
    %cst_48 = arith.constant 0.000000e+00 : f32
    %111 = vector.broadcast %cst_48 : f32 to vector<16x128xf32>
    %112 = arith.maximumf %110, %111 : vector<16x128xf32>
    %c0_49 = arith.constant 0 : index
    %c0_50 = arith.constant 0 : index
    %113 = vector.load %arg13[%c0_49, %c0_50] : memref<128x128xbf16, #tpu.memory_space<vmem>>, vector<128x128xbf16>
    %c0_51 = arith.constant 0 : index
    %c0_52 = arith.constant 0 : index
    %114 = vector.load %arg14[%c0_51, %c0_52] : memref<1x128xf32, #tpu.memory_space<vmem>>, vector<1x128xf32>
    %115 = arith.truncf %112 : vector<16x128xf32> to vector<16x128xbf16>
    %cst_53 = arith.constant dense<0.000000e+00> : vector<16x128xf32>
    %116 = tpu.matmul %115, %113, %cst_53 {dimension_numbers = #tpu.dot_dimension_numbers<[1], [0], [0], [1], [0, 0, 1, 1], [], []>} : vector<16x128xbf16>, vector<128x128xbf16>, vector<16x128xf32> -> vector<16x128xf32>
    %117 = vector.broadcast %114 : vector<1x128xf32> to vector<16x128xf32>
    %118 = arith.addf %116, %117 : vector<16x128xf32>
    %cst_54 = arith.constant 0.000000e+00 : f32
    %119 = vector.broadcast %cst_54 : f32 to vector<16x128xf32>
    %120 = arith.maximumf %118, %119 : vector<16x128xf32>
    %c0_55 = arith.constant 0 : index
    %c0_56 = arith.constant 0 : index
    %121 = vector.load %arg15[%c0_55, %c0_56] : memref<16x128xf32, #tpu.memory_space<vmem>>, vector<16x128xf32>
    tpu.vector_store %arg15[%c0_55, %c0_56], %120 {strides = array<i32>} : memref<16x128xf32, #tpu.memory_space<vmem>>, vector<16x128xf32>,
    return
  }
}

</mosaic_0001>

<bundles_post_ra>
// kernel: hlnet_batchnorm_forward.1
= control target key start
LH: loop header
LB: loop body
LE: loop exit
PB: predicated region body
PF: predicated region fallthrough
CT: control target
= control target key end

     0   :  { %v861_v0 = vmov 0.0   ;;  %vm862_vm0 = vmmov 0   ;;  %v51_v20 = vlaneseq  ;;  %s1135_s1 = inlined_call_operand.vmem [shape: bf16[128,128], index: 1, kind: input, shape index: {}]   ;;  %s1136_s0 = inlined_call_operand.vmem [shape: f32[16,128], index: 0, kind: input, shape index: {}]   ;;  %s1137_s5 = inlined_call_operand.vmem [shape: bf16[128,128], index: 5, kind: input, shape index: {}]   ;;  %s1138_s2 = inlined_call_operand.vmem [shape: f32[1,128], index: 2, kind: input, shape index: {}]   ;;  %s1139_s3 = inlined_call_operand.vmem [shape: f32[1,128], index: 3, kind: input, shape index: {}]   ;;  %s1140_s4 = inlined_call_operand.vmem [shape: f32[1,128], index: 4, kind: input, shape index: {}]   ;;  %s1141_s9 = inlined_call_operand.vmem [shape: bf16[128,128], index: 9, kind: input, shape index: {}]   ;;  %s1142_s6 = inlined_call_operand.vmem [shape: f32[1,128], index: 6, kind: input, shape index: {}]   ;;  %s1143_s7 = inlined_call_operand.vmem [shape: f32[1,128], index: 7, kind: input, shape index: {}]   ;;  %s1144_s8 = inlined_call_operand.vmem [shape: f32[1,128], index: 8, kind: input, shape index: {}]   ;;  %s1145_s13 = inlined_call_operand.vmem [shape: bf16[128,128], index: 13, kind: input, shape index: {}]   ;;  %s1146_s10 = inlined_call_operand.vmem [shape: f32[1,128], index: 10, kind: input, shape index: {}]   ;;  %s1147_s11 = inlined_call_operand.vmem [shape: f32[1,128], index: 11, kind: input, shape index: {}]   ;;  %s1148_s12 = inlined_call_operand.vmem [shape: f32[1,128], index: 12, kind: input, shape index: {}]   ;;  %s1149_s14 = inlined_call_operand.vmem [shape: f32[1,128], index: 14, kind: input, shape index: {}]   ;;  %s1150_s15 = inlined_call_operand.vmem [shape: f32[16,128], index: 15, kind: output, shape index: {}]  }
   0x1   :  { %741 = vmatprep.subr.bf16.mxu0 %v861_v0  ;;  %v823_v1 = vld [vmem:[%s1135_s1] sm:$0xff]   ;;  %757 = vmatprep.mubr.msk.bf16.mxu0 %vm862_vm0, %v861_v0  ;;  %v824_v2 = vld [vmem:[%s1135_s1 + $0x8] sm:$0xff]   ;;  %v825_v3 = vld [vmem:[%s1135_s1 + $0x10] sm:$0xff]  }
   0x2   :  { %761 = vmatprep.subr.bf16.mxu1 %v861_v0  ;;  %777 = vmatprep.mubr.msk.bf16.mxu1 %vm862_vm0, %v861_v0  ;;  %v826_v4 = vld [vmem:[%s1135_s1 + $0x18] sm:$0xff]   ;;  %v827_v5 = vld [vmem:[%s1135_s1 + $0x20] sm:$0xff]   ;;  %v828_v6 = vld [vmem:[%s1135_s1 + $0x28] sm:$0xff]   ;;  %v52_v21 = vshrl.u32 %v51_v20, 7 }
   0x3   :  { %742 = vmatpush3.bf16.msra.mxu0 %v823_v1  ;;  %v829_v7 = vld [vmem:[%s1135_s1 + $0x30] sm:$0xff]   ;;  %v830_v8 = vld [vmem:[%s1135_s1 + $0x38] sm:$0xff]   ;;  %v60_v9 = vld [vmem:[%s1136_s0] sm:$0xff] }
   0x4   :  { %743 = vmatprep.subr.bf16.mxu0 %v861_v0  ;;  %v61_v10 = vld [vmem:[%s1136_s0 + $0x8] sm:$0xff]  ;;  %v831_v12 = vld [vmem:[%s1137_s5] sm:$0xff]   ;;  %v833_v14 = vld [vmem:[%s1137_s5 + $0x10] sm:$0xff]   ;;  %v53_v22 = vadd.s32 8, %v52_v21  ;;  %v1031_v57 = vsub.s32 0, %v52_v21 }
   0x5   :  { %v81_v11 = vpack.c.bf16 %v61_v10, %v60_v9  ;;  %762 = vmatpush3.bf16.msra.mxu1 %v831_v12  ;;  %v832_v13 = vld [vmem:[%s1137_s5 + $0x8] sm:$0xff]   ;;  %v834_v15 = vld [vmem:[%s1137_s5 + $0x18] sm:$0xff]   ;;  %v835_v16 = vld [vmem:[%s1137_s5 + $0x20] sm:$0xff]  }
   0x6   :  { %763 = vmatprep.subr.bf16.mxu1 %v861_v0  ;;  %v836_v17 = vld [vmem:[%s1137_s5 + $0x28] sm:$0xff]   ;;  %v837_v18 = vld [vmem:[%s1137_s5 + $0x30] sm:$0xff]   ;;  %v838_v19 = vld [vmem:[%s1137_s5 + $0x38] sm:$0xff]   ;;  %vm55_vm1 = vcmp.lt.s32.totalorder %v53_v22, 13 }
   0x7   :  { %744 = vmatpush3.bf16.msra.mxu0 %v824_v2  ;;  %v669_v23 = vld [vmem:[%s1138_s2] ss:$0 sm:$0xff]  ;;  %v1025_v30 = vsel %vm55_vm1, 1.0, %v861_v0  ;;  %v841_v9 = vld [vmem:[%s1141_s9 + $0x10] sm:$0xff]   ;;  %v842_v10 = vld [vmem:[%s1141_s9 + $0x18] sm:$0xff]  }
   0x8   :  { %745 = vmatprep.subr.bf16.mxu0 %v861_v0  ;;  %v79_v56 = vld [vmem:[%s1139_s3] sm:$0x1]  ;;  %v844_v12 = vld [vmem:[%s1141_s9 + $0x28] sm:$0xff]  }
   0x9   :  { %764 = vmatpush3.bf16.msra.mxu1 %v832_v13  ;;  %v80_v60 = vld [vmem:[%s1140_s4] sm:$0x1]  ;;  %v845_v13 = vld [vmem:[%s1141_s9 + $0x30] sm:$0xff]  }
   0xa   :  { %765 = vmatprep.subr.bf16.mxu1 %v861_v0 }
   0xb   :  { %746 = vmatpush3.bf16.msra.mxu0 %v825_v3 }
   0xc   :  { %747 = vmatprep.subr.bf16.mxu0 %v861_v0 }
   0xd   :  { %766 = vmatpush3.bf16.msra.mxu1 %v833_v14  ;;  %v846_v14 = vld [vmem:[%s1141_s9 + $0x38] sm:$0xff]  }
   0xe   :  { %767 = vmatprep.subr.bf16.mxu1 %v861_v0 }
   0xf   :  { %748 = vmatpush3.bf16.msra.mxu0 %v826_v4 }
  0x10   :  { %749 = vmatprep.subr.bf16.mxu0 %v861_v0 }
  0x11   :  { %768 = vmatpush3.bf16.msra.mxu1 %v834_v15  ;;  %v678_v15 = vld [vmem:[%s1142_s6] ss:$0 sm:$0xff] }
  0x12   :  { %769 = vmatprep.subr.bf16.mxu1 %v861_v0 }
  0x13   :  { %750 = vmatpush3.bf16.msra.mxu0 %v827_v5 }
  0x14   :  { %751 = vmatprep.subr.bf16.mxu0 %v861_v0 }
  0x15   :  { %770 = vmatpush3.bf16.msra.mxu1 %v835_v16 }
  0x16   :  { %771 = vmatprep.subr.bf16.mxu1 %v861_v0 }
  0x17   :  { %752 = vmatpush3.bf16.msra.mxu0 %v828_v6 }
  0x18   :  { %753 = vmatprep.subr.bf16.mxu0 %v861_v0 }
  0x19   :  { %772 = vmatpush3.bf16.msra.mxu1 %v836_v17 }
  0x1a   :  { %773 = vmatprep.subr.bf16.mxu1 %v861_v0 }
  0x1b   :  { %754 = vmatpush3.bf16.msra.mxu0 %v829_v7  ;;  %v839_v7 = vld [vmem:[%s1141_s9] sm:$0xff]  }
  0x1c   :  { %755 = vmatprep.subr.bf16.mxu0 %v861_v0 }
  0x1d   :  { %774 = vmatpush3.bf16.msra.mxu1 %v837_v18 }
  0x1e   :  { %775 = vmatprep.subr.bf16.mxu1 %v861_v0 }
  0x1f   :  { %756 = vmatpush3.bf16.msra.mxu0 %v830_v8  ;;  %v840_v8 = vld [vmem:[%s1141_s9 + $0x8] sm:$0xff]  }
  0x20   :  { %781 = vmatprep.subr.bf16.mxu0 %v861_v0 }
  0x21   :  { %776 = vmatpush3.bf16.msra.mxu1 %v838_v19 }
  0x22   :  { %758 = vmatmul.mubr.bf16.vlgmr.msra.gmra.mrb[0].mxu0 %v81_v11  ;;  %801 = vmatprep.subr.bf16.mxu1 %v861_v0  ;;  %v843_v11 = vld [vmem:[%s1141_s9 + $0x20] sm:$0xff]  }
  0x23   :  { %797 = vmatprep.mubr.msk.bf16.mxu0 %vm862_vm0, %v861_v0  ;;  %782 = vmatpush3.bf16.msra.mxu0 %v839_v7  ;;  %v687_v7 = vld [vmem:[%s1146_s10] ss:$0 sm:$0xff] }
  0x24   :  { %783 = vmatprep.subr.bf16.mxu0 %v861_v0 }
  0x27   :  { %784 = vmatpush3.bf16.msra.mxu0 %v840_v8 }
  0x28   :  { %785 = vmatprep.subr.bf16.mxu0 %v861_v0 }
  0x2b   :  { %786 = vmatpush3.bf16.msra.mxu0 %v841_v9 }
  0x2c   :  { %787 = vmatprep.subr.bf16.mxu0 %v861_v0 }
  0x2f   :  { %788 = vmatpush3.bf16.msra.mxu0 %v842_v10 }
  0x30   :  { %789 = vmatprep.subr.bf16.mxu0 %v861_v0 }
  0x33   :  { %790 = vmatpush3.bf16.msra.mxu0 %v843_v11 }
  0x34   :  { %791 = vmatprep.subr.bf16.mxu0 %v861_v0 }
  0x37   :  { %792 = vmatpush3.bf16.msra.mxu0 %v844_v12 }
  0x38   :  { %793 = vmatprep.subr.bf16.mxu0 %v861_v0 }
  0x3b   :  { %794 = vmatpush3.bf16.msra.mxu0 %v845_v13 }
  0x3c   :  { %795 = vmatprep.subr.bf16.mxu0 %v861_v0 }
  0x3f   :  { %796 = vmatpush3.bf16.msra.mxu0 %v846_v14 }
  0xf5   :  { %v170_v24 = vpop.f32.mrb[0].mxu0 }
  0xf6   :  { %v171_v25 = vadd.f32 %v669_v23, %v170_v24  ;;  %v759_v26 = vpop.f32.mrb[1].mxu0 }
  0xf7   :  { %v173_v27 = vpop.f32.mrb[2].mxu0 }
  0xf8   :  { %v174_v28 = vadd.f32 %v669_v23, %v173_v27  ;;  %v760_v29 = vpop.f32.mrb[3].mxu0  ;;  %v177_v31 = vmax.f32 %v171_v25, 0.0 }
  0xfa   :  { %v178_v32 = vmax.f32 %v174_v28, 0.0  ;;  %v188_v34 = vmul.f32 %v177_v31, %v177_v31 }
  0xfc   :  { %v180_v33 = vmul.f32 %v1025_v30, %v178_v32 }
  0xfe   :  { %v181_v35 = vadd.f32 %v180_v33, %v177_v31  ;;  %v189_v36 = vmul.f32 %v180_v33, %v178_v32 }
 0x100   :  { %v182_v37 = vrot.slane %v181_v35, 4  ;;  %v190_v38 = vadd.f32 %v189_v36, %v188_v34 }
 0x102   :  { %v183_v39 = vadd.f32 %v182_v37, %v181_v35  ;;  %v191_v40 = vrot.slane %v190_v38, 4 }
 0x104   :  { %v184_v41 = vrot.slane %v183_v39, 2  ;;  %v192_v42 = vadd.f32 %v191_v40, %v190_v38 }
 0x106   :  { %v185_v43 = vadd.f32 %v184_v41, %v183_v39  ;;  %v193_v44 = vrot.slane %v192_v42, 2 }
 0x108   :  { %v186_v45 = vrot.slane %v185_v43, 1  ;;  %v194_v46 = vadd.f32 %v193_v44, %v192_v42 }
 0x10a   :  { %v187_v47 = vadd.f32 %v186_v45, %v185_v43  ;;  %v195_v48 = vrot.slane %v194_v46, 1 }
 0x10c   :  { %v196_v49 = vadd.f32 %v195_v48, %v194_v46  ;;  %v197_v50 = vmul.f32 0.07692308, %v187_v47  ;;  %v240_v48 = vld [vmem:[%s1143_s7] sm:$0x1] }
 0x10e   :  { %v198_v51 = vmul.f32 0.07692308, %v196_v49  ;;  %v199_v52 = vmul.f32 %v197_v50, %v197_v50 }
 0x110   :  { %v200_v53 = vsub.f32 %v198_v51, %v199_v52  ;;  %v241_v51 = vld [vmem:[%s1144_s8] sm:$0x1] }
 0x112   :  { %v201_v54 = vmax.f32 %v200_v53, 0.0 }
 0x114   :  { %v202_v55 = vadd.f32 1e-05, %v201_v54 }
 0x116   :  { %855 = vrsqrt.f32 %v202_v55 }
 0x120   :  { %v856_v58 = vpop.eup %855 }
 0x121   :  { %v204_v59 = vmul.f32 %v856_v58, %v79_v56 }
 0x123   :  { %v205_v61 = vmul.f32 %v204_v59, %v197_v50  ;;  %v211_v62 = vrot.slane %v204_v59, %v1031_v57 }
 0x125   :  { %v214_v63 = vmul.f32 %v211_v62, %v178_v32  ;;  %v206_v1 = vsub.f32 %v80_v60, %v205_v61  ;;  %v213_v2 = vmul.f32 %v211_v62, %v177_v31  ;;  %v847_v62 = vld [vmem:[%s1145_s13] sm:$0xff]  }
 0x127   :  { %v219_v3 = vrot.slane %v206_v1, %v1031_v57  ;;  %v849_v1 = vld [vmem:[%s1145_s13 + $0x10] sm:$0xff]  }
 0x129   :  { %v221_v4 = vadd.f32 %v219_v3, %v213_v2  ;;  %v222_v5 = vadd.f32 %v219_v3, %v214_v63  ;;  %v848_v63 = vld [vmem:[%s1145_s13 + $0x8] sm:$0xff]   ;;  %v850_v2 = vld [vmem:[%s1145_s13 + $0x18] sm:$0xff]   ;;  %v851_v3 = vld [vmem:[%s1145_s13 + $0x20] sm:$0xff]  }
 0x12b   :  { %v242_v6 = vpack.c.bf16 %v222_v5, %v221_v4  ;;  %v852_v4 = vld [vmem:[%s1145_s13 + $0x28] sm:$0xff]   ;;  %v853_v5 = vld [vmem:[%s1145_s13 + $0x30] sm:$0xff]  }
 0x12d   :  { %778 = vmatmul.mubr.bf16.vlgmr.msra.gmra.mrb[0].mxu1 %v242_v6  ;;  %v854_v6 = vld [vmem:[%s1145_s13 + $0x38] sm:$0xff]  }
 0x12e   :  { %817 = vmatprep.mubr.msk.bf16.mxu1 %vm862_vm0, %v861_v0  ;;  %802 = vmatpush3.bf16.msra.mxu1 %v847_v62 }
 0x12f   :  { %803 = vmatprep.subr.bf16.mxu1 %v861_v0 }
 0x132   :  { %804 = vmatpush3.bf16.msra.mxu1 %v848_v63 }
 0x133   :  { %805 = vmatprep.subr.bf16.mxu1 %v861_v0 }
 0x136   :  { %806 = vmatpush3.bf16.msra.mxu1 %v849_v1 }
 0x137   :  { %807 = vmatprep.subr.bf16.mxu1 %v861_v0 }
 0x13a   :  { %808 = vmatpush3.bf16.msra.mxu1 %v850_v2 }
 0x13b   :  { %809 = vmatprep.subr.bf16.mxu1 %v861_v0 }
 0x13e   :  { %810 = vmatpush3.bf16.msra.mxu1 %v851_v3 }
 0x13f   :  { %811 = vmatprep.subr.bf16.mxu1 %v861_v0 }
 0x142   :  { %812 = vmatpush3.bf16.msra.mxu1 %v852_v4 }
 0x143   :  { %813 = vmatprep.subr.bf16.mxu1 %v861_v0 }
 0x146   :  { %814 = vmatpush3.bf16.msra.mxu1 %v853_v5 }
 0x147   :  { %815 = vmatprep.subr.bf16.mxu1 %v861_v0 }
 0x14a   :  { %816 = vmatpush3.bf16.msra.mxu1 %v854_v6 }
 0x200   :  { %v331_v16 = vpop.f32.mrb[0].mxu1 }
 0x201   :  { %v332_v17 = vadd.f32 %v678_v15, %v331_v16  ;;  %v779_v18 = vpop.f32.mrb[1].mxu1 }
 0x202   :  { %v334_v19 = vpop.f32.mrb[2].mxu1 }
 0x203   :  { %v335_v20 = vadd.f32 %v678_v15, %v334_v19  ;;  %v780_v21 = vpop.f32.mrb[3].mxu1  ;;  %v338_v22 = vmax.f32 %v332_v17, 0.0 }
 0x205   :  { %v339_v23 = vmax.f32 %v335_v20, 0.0  ;;  %v349_v25 = vmul.f32 %v338_v22, %v338_v22 }
 0x207   :  { %v341_v24 = vmul.f32 %v1025_v30, %v339_v23 }
 0x209   :  { %v342_v26 = vadd.f32 %v341_v24, %v338_v22  ;;  %v350_v27 = vmul.f32 %v341_v24, %v339_v23 }
 0x20b   :  { %v343_v28 = vrot.slane %v342_v26, 4  ;;  %v351_v29 = vadd.f32 %v350_v27, %v349_v25 }
 0x20d   :  { %v344_v31 = vadd.f32 %v343_v28, %v342_v26  ;;  %v352_v32 = vrot.slane %v351_v29, 4 }
 0x20f   :  { %v345_v33 = vrot.slane %v344_v31, 2  ;;  %v353_v34 = vadd.f32 %v352_v32, %v351_v29 }
 0x211   :  { %v346_v35 = vadd.f32 %v345_v33, %v344_v31  ;;  %v354_v36 = vrot.slane %v353_v34, 2 }
 0x213   :  { %v347_v37 = vrot.slane %v346_v35, 1  ;;  %v355_v38 = vadd.f32 %v354_v36, %v353_v34 }
 0x215   :  { %v348_v39 = vadd.f32 %v347_v37, %v346_v35  ;;  %v356_v40 = vrot.slane %v355_v38, 1 }
 0x217   :  { %v357_v41 = vadd.f32 %v356_v40, %v355_v38  ;;  %v358_v42 = vmul.f32 0.07692308, %v348_v39  ;;  %v401_v38 = vld [vmem:[%s1147_s11] sm:$0x1] }
 0x219   :  { %v359_v43 = vmul.f32 0.07692308, %v357_v41  ;;  %v360_v44 = vmul.f32 %v358_v42, %v358_v42  ;;  %v402_v41 = vld [vmem:[%s1148_s12] sm:$0x1] }
 0x21b   :  { %v361_v45 = vsub.f32 %v359_v43, %v360_v44 }
 0x21d   :  { %v362_v46 = vmax.f32 %v361_v45, 0.0 }
 0x21f   :  { %v363_v47 = vadd.f32 1e-05, %v362_v46 }
 0x221   :  { %857 = vrsqrt.f32 %v363_v47 }
 0x22b   :  { %v858_v49 = vpop.eup %857 }
 0x22c   :  { %v365_v50 = vmul.f32 %v858_v49, %v240_v48 }
 0x22e   :  { %v366_v52 = vmul.f32 %v365_v50, %v358_v42  ;;  %v372_v53 = vrot.slane %v365_v50, %v1031_v57 }
 0x230   :  { %v367_v54 = vsub.f32 %v241_v51, %v366_v52  ;;  %v374_v55 = vmul.f32 %v372_v53, %v338_v22  ;;  %v375_v56 = vmul.f32 %v372_v53, %v339_v23  ;;  %v696_v53 = vld [vmem:[%s1149_s14] ss:$0 sm:$0xff] }
 0x232   :  { %v380_v58 = vrot.slane %v367_v54, %v1031_v57 }
 0x234   :  { %v383_v59 = vadd.f32 %v380_v58, %v375_v56  ;;  %v382_v60 = vadd.f32 %v380_v58, %v374_v55 }
 0x236   :  { %v403_v61 = vpack.c.bf16 %v383_v59, %v382_v60 }
 0x238   :  { %798 = vmatmul.mubr.bf16.vlgmr.msra.gmra.mrb[4].mxu0 %v403_v61 }
 0x30b   :  { %v492_v8 = vpop.f32.mrb[4].mxu0 }
 0x30c   :  { %v493_v9 = vadd.f32 %v687_v7, %v492_v8  ;;  %v799_v10 = vpop.f32.mrb[5].mxu0 }
 0x30d   :  { %v495_v11 = vpop.f32.mrb[6].mxu0 }
 0x30e   :  { %v496_v12 = vadd.f32 %v687_v7, %v495_v11  ;;  %v800_v13 = vpop.f32.mrb[7].mxu0  ;;  %v499_v14 = vmax.f32 %v493_v9, 0.0 }
 0x310   :  { %v500_v15 = vmax.f32 %v496_v12, 0.0  ;;  %v510_v0 = vmul.f32 %v499_v14, %v499_v14 }
 0x312   :  { %v502_v16 = vmul.f32 %v1025_v30, %v500_v15 }
 0x314   :  { %v503_v17 = vadd.f32 %v502_v16, %v499_v14  ;;  %v511_v18 = vmul.f32 %v502_v16, %v500_v15 }
 0x316   :  { %v504_v19 = vrot.slane %v503_v17, 4  ;;  %v512_v20 = vadd.f32 %v511_v18, %v510_v0 }
 0x318   :  { %v505_v21 = vadd.f32 %v504_v19, %v503_v17  ;;  %v513_v22 = vrot.slane %v512_v20, 4 }
 0x31a   :  { %v506_v23 = vrot.slane %v505_v21, 2  ;;  %v514_v24 = vadd.f32 %v513_v22, %v512_v20 }
 0x31c   :  { %v507_v25 = vadd.f32 %v506_v23, %v505_v21  ;;  %v515_v26 = vrot.slane %v514_v24, 2 }
 0x31e   :  { %v508_v27 = vrot.slane %v507_v25, 1  ;;  %v516_v28 = vadd.f32 %v515_v26, %v514_v24 }
 0x320   :  { %v509_v29 = vadd.f32 %v508_v27, %v507_v25  ;;  %v517_v31 = vrot.slane %v516_v28, 1 }
 0x322   :  { %v518_v32 = vadd.f32 %v517_v31, %v516_v28  ;;  %v519_v33 = vmul.f32 0.07692308, %v509_v29 }
 0x324   :  { %v520_v34 = vmul.f32 0.07692308, %v518_v32  ;;  %v521_v35 = vmul.f32 %v519_v33, %v519_v33 }
 0x326   :  { %v522_v30 = vsub.f32 %v520_v34, %v521_v35 }
 0x328   :  { %v523_v36 = vmax.f32 %v522_v30, 0.0 }
 0x32a   :  { %v524_v37 = vadd.f32 1e-05, %v523_v36 }
 0x32c   :  { %859 = vrsqrt.f32 %v524_v37 }
 0x336   :  { %v860_v39 = vpop.eup %859 }
 0x337   :  { %v526_v40 = vmul.f32 %v860_v39, %v401_v38 }
 0x339   :  { %v527_v42 = vmul.f32 %v526_v40, %v519_v33  ;;  %v533_v43 = vrot.slane %v526_v40, %v1031_v57 }
 0x33b   :  { %v528_v44 = vsub.f32 %v402_v41, %v527_v42  ;;  %v535_v45 = vmul.f32 %v533_v43, %v499_v14  ;;  %v536_v46 = vmul.f32 %v533_v43, %v500_v15 }
 0x33d   :  { %v541_v47 = vrot.slane %v528_v44, %v1031_v57 }
 0x33f   :  { %v544_v48 = vadd.f32 %v541_v47, %v536_v46  ;;  %v543_v49 = vadd.f32 %v541_v47, %v535_v45 }
 0x341   :  { %v546_v50 = vmax.f32 %v544_v48, 0.0  ;;  %v545_v51 = vmax.f32 %v543_v49, 0.0 }
 0x343   :  { %v564_v52 = vpack.c.bf16 %v546_v50, %v545_v51 }
 0x345   :  { %818 = vmatmul.mubr.bf16.vlgmr.msra.gmra.mrb[4].mxu1 %v564_v52 }
 0x418   :  { %v653_v54 = vpop.f32.mrb[4].mxu1 }
 0x419   :  { %v654_v55 = vadd.f32 %v696_v53, %v653_v54  ;;  %v819_v56 = vpop.f32.mrb[5].mxu1 }
 0x41a   :  { %v656_v58 = vpop.f32.mrb[6].mxu1 }
 0x41b   :  { %v660_v59 = vmax.f32 %v654_v55, 0.0  ;;  %v657_v60 = vadd.f32 %v696_v53, %v656_v58  ;;  %v820_v61 = vpop.f32.mrb[7].mxu1 }
 0x41d   :  { %662 = vst [vmem:[%s1150_s15] sm:$0xff] %v660_v59  ;;  %v661_v57 = vmax.f32 %v657_v60, 0.0 }
 0x41f   :  { %663 = vst [vmem:[%s1150_s15 + $0x8] sm:$0xff] %v661_v57 }

</bundles_post_ra>
